<compile_context>
chip_gen: v7x
topology: tpu7x:2x2x1
jax: 0.10.0
libtpu: 0.0.40
codegen_flags: <defaults>
</compile_context>

<pallas_src>
import math

import numpy as np
import jax
import jax.numpy as jnp
from jax.experimental import pallas as pl
from jax.experimental.pallas import tpu as pltpu


# ----------------------------------------------------------------------------
# Fused Pallas kernel: the whole DSCNet forward as a chain of small matmuls.
# ----------------------------------------------------------------------------
def _make_fused_kernel(n_enc, n_dec):
    """Kernel refs: x, (W,b)*n_enc, coef, (W,b)*n_dec, x_recon, z, z_recon."""

    def kernel(*refs):
        idx = 0
        a = refs[idx][...]                              # (N, Cin*H*W) f32
        idx += 1
        # ---- encoder ----
        for _ in range(n_enc):
            w = refs[idx][...]                          # (K, M)
            b = refs[idx + 1][...]                      # (1, M)
            idx += 2
            a = jnp.maximum(
                jnp.dot(a, w, preferred_element_type=jnp.float32) + b, 0.0)
        z = a                                           # (N, z_dim)
        # ---- self-expression: z_recon = Coefficient @ z ----
        coef = refs[idx][...]                           # (N, N)
        idx += 1
        zr = jnp.dot(coef, z, preferred_element_type=jnp.float32)
        a = zr
        # ---- decoder ----
        for _ in range(n_dec):
            w = refs[idx][...]
            b = refs[idx + 1][...]
            idx += 2
            a = jnp.maximum(
                jnp.dot(a, w, preferred_element_type=jnp.float32) + b, 0.0)
        # ---- outputs ----
        x_rec_ref, z_out_ref, zr_out_ref = refs[idx], refs[idx + 1], refs[idx + 2]
        x_rec_ref[...] = a
        z_out_ref[...] = z
        zr_out_ref[...] = zr

    return kernel


def build_fused_forward(packed):
    """Build the single-launch forward for the packed parameter set."""
    n_enc, n_dec = packed["n_enc"], packed["n_dec"]
    n = packed["n"]
    num_in = 1 + 2 * n_enc + 1 + 2 * n_dec

    call = pl.pallas_call(
        _make_fused_kernel(n_enc, n_dec),
        out_shape=(
            jax.ShapeDtypeStruct((n, packed["out_features"]), jnp.float32),
            jax.ShapeDtypeStruct((n, packed["z_dim"]), jnp.float32),
            jax.ShapeDtypeStruct((n, packed["z_dim"]), jnp.float32),
        ),
        in_specs=[pl.BlockSpec(memory_space=pltpu.MemorySpace.VMEM)] * num_in,
        out_specs=(
            pl.BlockSpec(memory_space=pltpu.MemorySpace.VMEM),
            pl.BlockSpec(memory_space=pltpu.MemorySpace.VMEM),
            pl.BlockSpec(memory_space=pltpu.MemorySpace.VMEM),
        ),
    )

    c0, h0, w0 = packed["x_recon_chw"]

    def forward(ops, x_nchw):
        nb = x_nchw.shape[0]
        x2d = x_nchw.reshape(nb, -1)                    # (N, C*H*W), free reshape
        x_rec_flat, z, z_recon = call(x2d, *ops)
        return x_rec_flat.reshape(nb, c0, h0, w0), z, z_recon

    return forward


# ----------------------------------------------------------------------------
# Host-side (one-time) weight packing: conv layers -> dense matrices.
# ----------------------------------------------------------------------------
def _conv_toeplitz(w, b, k, stride, h_in, w_in):
    """Conv2dSamePad(k, stride) + Conv2d(k, stride) as a dense matrix.

    x_flat (per sample, NCHW order) @ T + bias_full == conv output flattened
    in (co, oh, ow) order.  w: (Cout, Cin, k, k)."""
    c_out, c_in = w.shape[0], w.shape[1]
    h_out, w_out = math.ceil(h_in / stride), math.ceil(w_in / stride)
    pad_h = max((h_out - 1) * stride + k - h_in, 0)
    pad_w = max((w_out - 1) * stride + k - w_in, 0)
    pad_t, pad_l = pad_h // 2, pad_w // 2               # TF 'SAME': extra at bottom/right
    T = np.zeros((c_in * h_in * w_in, c_out * h_out * w_out), np.float32)
    ci_idx = np.arange(c_in) * (h_in * w_in)
    co_idx = np.arange(c_out) * (h_out * w_out)
    for oh in range(h_out):
        for ow in range(w_out):
            for di in range(k):
                for dj in range(k):
                    ih = oh * stride + di - pad_t
                    iw = ow * stride + dj - pad_l
                    if 0 <= ih < h_in and 0 <= iw < w_in:
                        T[np.ix_(ci_idx + ih * w_in + iw,
                                 co_idx + oh * w_out + ow)] += w[:, :, di, dj].T
    bias_full = np.repeat(np.asarray(b, np.float32), h_out * w_out)
    return T, bias_full, (c_out, h_out, w_out)


def _deconv_toeplitz(w, b, k, stride, h_in, w_in):
    """ConvTranspose2d(k, stride) + ConvTranspose2dSamePad as a dense matrix.

    w: PyTorch ConvTranspose2d layout (Cin, Cout, k, k). Output spatial is
    exactly stride*h_in x stride*w_in (the SamePad crop is baked in)."""
    c_in, c_out = w.shape[0], w.shape[1]
    h_out, w_out = h_in * stride, w_in * stride
    crop_t = (k - stride) // 2                          # rows removed from the top
    crop_l = (k - stride) // 2
    T = np.zeros((c_in * h_in * w_in, c_out * h_out * w_out), np.float32)
    ci_idx = np.arange(c_in) * (h_in * w_in)
    co_idx = np.arange(c_out) * (h_out * w_out)
    for ih in range(h_in):
        for iw in range(w_in):
            for di in range(k):
                for dj in range(k):
                    oh = ih * stride + di - crop_t
                    ow = iw * stride + dj - crop_l
                    if 0 <= oh < h_out and 0 <= ow < w_out:
                        T[np.ix_(ci_idx + ih * w_in + iw,
                                 co_idx + oh * w_out + ow)] += w[:, :, di, dj]
    bias_full = np.repeat(np.asarray(b, np.float32), h_out * w_out)
    return T, bias_full, (c_out, h_out, w_out)


def pack_params(params, channels, kernels, height, width):
    """Fold padding conventions, strides and weight layouts into dense
    per-layer matrices ONCE (outside the per-forward jitted path)."""
    npp = {k: np.asarray(v, np.float32) for k, v in params.items()}
    ops = []
    h, w = height, width
    for i, k in enumerate(kernels):                     # encoder
        T, bf, (_, h, w) = _conv_toeplitz(npp[f"enc_w{i}"], npp[f"enc_b{i}"],
                                          k, 2, h, w)
        ops += [jnp.asarray(T), jnp.asarray(bf[None, :])]
    z_dim = channels[-1] * h * w
    ops.append(jnp.asarray(npp["coef"]))                # self-expression
    for i, k in enumerate(reversed(kernels)):           # decoder
        T, bf, (_, h, w) = _deconv_toeplitz(npp[f"dec_w{i}"], npp[f"dec_b{i}"],
                                            k, 2, h, w)
        ops += [jnp.asarray(T), jnp.asarray(bf[None, :])]
    return {
        "ops": ops,
        "n_enc": len(kernels),
        "n_dec": len(kernels),
        "n": int(npp["coef"].shape[0]),
        "z_dim": int(z_dim),
        "out_features": int(channels[0] * h * w),
        "x_recon_chw": (channels[0], h, w),
    }


# ----------------------------------------------------------------------------
# Parameter init (mirrors the PyTorch module's parameter layout).
# ----------------------------------------------------------------------------
def init_params(key, channels, kernels, n):
    params = {}
    keys = jax.random.split(key, 4 * len(kernels))
    ki = 0
    for i in range(1, len(channels)):                   # Conv2d: (Cout, Cin, k, k)
        k = kernels[i - 1]
        params[f"enc_w{i - 1}"] = 0.1 * jax.random.normal(
            keys[ki], (channels[i], channels[i - 1], k, k), jnp.float32); ki += 1
        params[f"enc_b{i - 1}"] = 0.1 * jax.random.normal(
            keys[ki], (channels[i],), jnp.float32); ki += 1
    rc = list(reversed(channels))
    rk = list(reversed(kernels))
    for i in range(len(rc) - 1):                        # ConvTranspose2d: (Cin, Cout, k, k)
        k = rk[i]
        params[f"dec_w{i}"] = 0.1 * jax.random.normal(
            keys[ki], (rc[i], rc[i + 1], k, k), jnp.float32); ki += 1
        params[f"dec_b{i}"] = 0.1 * jax.random.normal(
            keys[ki], (rc[i + 1],), jnp.float32); ki += 1
    params["coef"] = 1e-8 * jnp.ones((n, n), jnp.float32)   # SelfExpression
    return params


# ----------------------------------------------------------------------------
# Direct numpy transcription of the PyTorch DSCNet.forward (for verification).
# ----------------------------------------------------------------------------
def _numpy_reference(params, x, channels, kernels):
    p = {k: np.asarray(v, np.float32) for k, v in params.items()}
    s = 2
    h = np.asarray(x, np.float32)
    for i, k in enumerate(kernels):                     # encoder
        n, _, H, W = h.shape
        Ho, Wo = math.ceil(H / s), math.ceil(W / s)
        ph = max((Ho - 1) * s + k - H, 0)
        pw = max((Wo - 1) * s + k - W, 0)
        hp = np.pad(h, ((0, 0), (0, 0),
                        (ph // 2, ph - ph // 2), (pw // 2, pw - pw // 2)))
        wgt, b = p[f"enc_w{i}"], p[f"enc_b{i}"]
        out = np.zeros((n, wgt.shape[0], Ho, Wo), np.float32)
        for di in range(k):
            for dj in range(k):
                patch = hp[:, :, di:di + s * (Ho - 1) + 1:s,
                              dj:dj + s * (Wo - 1) + 1:s]
                out += np.einsum('oc,nchw->nohw', wgt[:, :, di, dj], patch)
        h = np.maximum(out + b.reshape(1, -1, 1, 1), 0.0)
    n = x.shape[0]
    z_shape = h.shape
    z = h.reshape(n, -1)
    z_recon = p["coef"] @ z
    h = z_recon.reshape(z_shape)
    for i, k in enumerate(reversed(kernels)):           # decoder
        wgt, b = p[f"dec_w{i}"], p[f"dec_b{i}"]         # (Cin, Cout, k, k)
        n, _, H, W = h.shape
        Hf, Wf = (H - 1) * s + k, (W - 1) * s + k
        full = np.zeros((n, wgt.shape[1], Hf, Wf), np.float32)
        for di in range(k):
            for dj in range(k):
                full[:, :, di:di + s * (H - 1) + 1:s,
                        dj:dj + s * (W - 1) + 1:s] += np.einsum(
                            'co,nchw->nohw', wgt[:, :, di, dj], h)
        crop_t = (k - s) // 2
        crop_b = (k - s) - crop_t
        full = full[:, :, crop_t:Hf - crop_b, crop_t:Wf - crop_b]
        h = np.maximum(full + b.reshape(1, -1, 1, 1), 0.0)
    return h, z, z_recon


# ----------------------------------------------------------------------------
if __name__ == "__main__":
    channels = [1, 4, 8]
    kernels = [3, 3]
    num_sample = 8                  # batch size == n for the self-expression layer
    H = W = 16

    key = jax.random.PRNGKey(0)
    kx, kp = jax.random.split(key)
    x = jax.random.normal(kx, (num_sample, channels[0], H, W), jnp.float32)
    params = init_params(kp, channels, kernels, num_sample)

    # One-time weight packing (host-side) + fused single-launch forward.
    packed = pack_params(params, channels, kernels, H, W)
    forward = jax.jit(build_fused_forward(packed))

    x_recon, z, z_recon = forward(packed["ops"], x)
    jax.block_until_ready((x_recon, z, z_recon))

    # Shape checks.
    assert x_recon.shape == x.shape                          # (8, 1, 16, 16)
    assert z.shape == (num_sample, packed["z_dim"])          # (8, 128)
    assert z_recon.shape == z.shape

    # Numeric check against a direct numpy implementation of the PyTorch module.
    xr_np, z_np, zr_np = _numpy_reference(params, np.asarray(x), channels, kernels)
    np.testing.assert_allclose(np.asarray(z), z_np, rtol=2e-2, atol=2e-2)
    np.testing.assert_allclose(np.asarray(z_recon), zr_np, rtol=2e-2, atol=2e-2)
    np.testing.assert_allclose(np.asarray(x_recon), xr_np, rtol=2e-2, atol=2e-2)

    print("KERNEL_OK")
</pallas_src>

<mosaic_0001>
module attributes {stable_mosaic.version = 11 : i64} {
  func.func @kernel(%arg0: memref<8x256xf32, #tpu.memory_space<vmem>>, %arg1: memref<256x256xf32, #tpu.memory_space<vmem>>, %arg2: memref<1x256xf32, #tpu.memory_space<vmem>>, %arg3: memref<256x128xf32, #tpu.memory_space<vmem>>, %arg4: memref<1x128xf32, #tpu.memory_space<vmem>>, %arg5: memref<8x8xf32, #tpu.memory_space<vmem>>, %arg6: memref<128x256xf32, #tpu.memory_space<vmem>>, %arg7: memref<1x256xf32, #tpu.memory_space<vmem>>, %arg8: memref<256x256xf32, #tpu.memory_space<vmem>>, %arg9: memref<1x256xf32, #tpu.memory_space<vmem>>, %arg10: memref<8x256xf32, #tpu.memory_space<vmem>>, %arg11: memref<8x128xf32, #tpu.memory_space<vmem>>, %arg12: memref<8x128xf32, #tpu.memory_space<vmem>>) attributes {dimension_semantics = [], scalar_prefetch = 0 : i64, scratch_operands = 0 : i64, tpu.core_type = #tpu.core_type<tc>} {
    %c0 = arith.constant 0 : index
    %c0_0 = arith.constant 0 : index
    %0 = vector.load %arg0[%c0, %c0_0] : memref<8x256xf32, #tpu.memory_space<vmem>>, vector<8x256xf32>
    %c0_1 = arith.constant 0 : index
    %c0_2 = arith.constant 0 : index
    %1 = vector.load %arg1[%c0_1, %c0_2] : memref<256x256xf32, #tpu.memory_space<vmem>>, vector<256x256xf32>
    %c0_3 = arith.constant 0 : index
    %c0_4 = arith.constant 0 : index
    %2 = vector.load %arg2[%c0_3, %c0_4] : memref<1x256xf32, #tpu.memory_space<vmem>>, vector<1x256xf32>
    %cst = arith.constant dense<0.000000e+00> : vector<8x256xf32>
    %3 = tpu.matmul %0, %1, %cst {dimension_numbers = #tpu.dot_dimension_numbers<[1], [0], [0], [1], [0, 0, 1, 1], [], []>} : vector<8x256xf32>, vector<256x256xf32>, vector<8x256xf32> -> vector<8x256xf32>
    %4 = vector.broadcast %2 : vector<1x256xf32> to vector<8x256xf32>
    %5 = arith.addf %3, %4 : vector<8x256xf32>
    %cst_5 = arith.constant 0.000000e+00 : f32
    %6 = vector.broadcast %cst_5 : f32 to vector<8x256xf32>
    %7 = arith.maximumf %5, %6 : vector<8x256xf32>
    %c0_6 = arith.constant 0 : index
    %c0_7 = arith.constant 0 : index
    %8 = vector.load %arg3[%c0_6, %c0_7] : memref<256x128xf32, #tpu.memory_space<vmem>>, vector<256x128xf32>
    %c0_8 = arith.constant 0 : index
    %c0_9 = arith.constant 0 : index
    %9 = vector.load %arg4[%c0_8, %c0_9] : memref<1x128xf32, #tpu.memory_space<vmem>>, vector<1x128xf32>
    %cst_10 = arith.constant dense<0.000000e+00> : vector<8x128xf32>
    %10 = tpu.matmul %7, %8, %cst_10 {dimension_numbers = #tpu.dot_dimension_numbers<[1], [0], [0], [1], [0, 0, 1, 1], [], []>} : vector<8x256xf32>, vector<256x128xf32>, vector<8x128xf32> -> vector<8x128xf32>
    %11 = vector.broadcast %9 : vector<1x128xf32> to vector<8x128xf32>
    %12 = arith.addf %10, %11 : vector<8x128xf32>
    %cst_11 = arith.constant 0.000000e+00 : f32
    %13 = vector.broadcast %cst_11 : f32 to vector<8x128xf32>
    %14 = arith.maximumf %12, %13 : vector<8x128xf32>
    %c0_12 = arith.constant 0 : index
    %c0_13 = arith.constant 0 : index
    %15 = vector.load %arg5[%c0_12, %c0_13] : memref<8x8xf32, #tpu.memory_space<vmem>>, vector<8x8xf32>
    %cst_14 = arith.constant dense<0.000000e+00> : vector<8x128xf32>
    %16 = tpu.matmul %15, %14, %cst_14 {dimension_numbers = #tpu.dot_dimension_numbers<[1], [0], [0], [1], [0, 0, 1, 1], [], []>} : vector<8x8xf32>, vector<8x128xf32>, vector<8x128xf32> -> vector<8x128xf32>
    %c0_15 = arith.constant 0 : index
    %c0_16 = arith.constant 0 : index
    %17 = vector.load %arg6[%c0_15, %c0_16] : memref<128x256xf32, #tpu.memory_space<vmem>>, vector<128x256xf32>
    %c0_17 = arith.constant 0 : index
    %c0_18 = arith.constant 0 : index
    %18 = vector.load %arg7[%c0_17, %c0_18] : memref<1x256xf32, #tpu.memory_space<vmem>>, vector<1x256xf32>
    %cst_19 = arith.constant dense<0.000000e+00> : vector<8x256xf32>
    %19 = tpu.matmul %16, %17, %cst_19 {dimension_numbers = #tpu.dot_dimension_numbers<[1], [0], [0], [1], [0, 0, 1, 1], [], []>} : vector<8x128xf32>, vector<128x256xf32>, vector<8x256xf32> -> vector<8x256xf32>
    %20 = vector.broadcast %18 : vector<1x256xf32> to vector<8x256xf32>
    %21 = arith.addf %19, %20 : vector<8x256xf32>
    %cst_20 = arith.constant 0.000000e+00 : f32
    %22 = vector.broadcast %cst_20 : f32 to vector<8x256xf32>
    %23 = arith.maximumf %21, %22 : vector<8x256xf32>
    %c0_21 = arith.constant 0 : index
    %c0_22 = arith.constant 0 : index
    %24 = vector.load %arg8[%c0_21, %c0_22] : memref<256x256xf32, #tpu.memory_space<vmem>>, vector<256x256xf32>
    %c0_23 = arith.constant 0 : index
    %c0_24 = arith.constant 0 : index
    %25 = vector.load %arg9[%c0_23, %c0_24] : memref<1x256xf32, #tpu.memory_space<vmem>>, vector<1x256xf32>
    %cst_25 = arith.constant dense<0.000000e+00> : vector<8x256xf32>
    %26 = tpu.matmul %23, %24, %cst_25 {dimension_numbers = #tpu.dot_dimension_numbers<[1], [0], [0], [1], [0, 0, 1, 1], [], []>} : vector<8x256xf32>, vector<256x256xf32>, vector<8x256xf32> -> vector<8x256xf32>
    %27 = vector.broadcast %25 : vector<1x256xf32> to vector<8x256xf32>
    %28 = arith.addf %26, %27 : vector<8x256xf32>
    %cst_26 = arith.constant 0.000000e+00 : f32
    %29 = vector.broadcast %cst_26 : f32 to vector<8x256xf32>
    %30 = arith.maximumf %28, %29 : vector<8x256xf32>
    %c0_27 = arith.constant 0 : index
    %c0_28 = arith.constant 0 : index
    %31 = vector.load %arg10[%c0_27, %c0_28] : memref<8x256xf32, #tpu.memory_space<vmem>>, vector<8x256xf32>
    tpu.vector_store %arg10[%c0_27, %c0_28], %30 {strides = array<i32>} : memref<8x256xf32, #tpu.memory_space<vmem>>, vector<8x256xf32>,
    %c0_29 = arith.constant 0 : index
    %c0_30 = arith.constant 0 : index
    %32 = vector.load %arg11[%c0_29, %c0_30] : memref<8x128xf32, #tpu.memory_space<vmem>>, vector<8x128xf32>
    tpu.vector_store %arg11[%c0_29, %c0_30], %14 {strides = array<i32>} : memref<8x128xf32, #tpu.memory_space<vmem>>, vector<8x128xf32>,
    %c0_31 = arith.constant 0 : index
    %c0_32 = arith.constant 0 : index
    %33 = vector.load %arg12[%c0_31, %c0_32] : memref<8x128xf32, #tpu.memory_space<vmem>>, vector<8x128xf32>
    tpu.vector_store %arg12[%c0_31, %c0_32], %16 {strides = array<i32>} : memref<8x128xf32, #tpu.memory_space<vmem>>, vector<8x128xf32>,
    return
  }
}

</mosaic_0001>

<bundles_post_ra>
// kernel: forward.1
= control target key start
LH: loop header
LB: loop body
LE: loop exit
PB: predicated region body
PF: predicated region fallthrough
CT: control target
= control target key end

     0   :  { %18 = vsyncpa [#allocation3], 0  ;;  %s1328_s0 = inlined_call_operand.vmem [shape: f32[8,256], index: 0, kind: input, shape index: {}]   ;;  %s1329_s1 = inlined_call_operand.hbm [shape: f32[256,256], index: 1, kind: input, shape index: {}]   ;;  %s1330_s2 = inlined_call_operand.vmem [shape: f32[1,256], index: 2, kind: input, shape index: {}]   ;;  %s1331_s3 = inlined_call_operand.hbm [shape: f32[256,128], index: 3, kind: input, shape index: {}]   ;;  %s1332_s4 = inlined_call_operand.vmem [shape: f32[1,128], index: 4, kind: input, shape index: {}]   ;;  %s1333_s5 = inlined_call_operand.vmem [shape: f32[8,8], index: 5, kind: input, shape index: {}]   ;;  %s1334_s6 = inlined_call_operand.hbm [shape: f32[128,256], index: 6, kind: input, shape index: {}]   ;;  %s1335_s7 = inlined_call_operand.vmem [shape: f32[1,256], index: 7, kind: input, shape index: {}]   ;;  %s1336_s8 = inlined_call_operand.hbm [shape: f32[256,256], index: 8, kind: input, shape index: {}]   ;;  %s1337_s9 = inlined_call_operand.vmem [shape: f32[1,256], index: 9, kind: input, shape index: {}]   ;;  %s1338_s10 = inlined_call_operand.vmem [shape: f32[8,256], index: 10, kind: output, shape index: {0}]   ;;  %s1339_s11 = inlined_call_operand.hbm [shape: f32[8,128], index: 11, kind: output, shape index: {1}]   ;;  %s1340_s12 = inlined_call_operand.hbm [shape: f32[8,128], index: 12, kind: output, shape index: {2}]  }
   0x1   :  { %19 = vsyncpa [#allocation6], 0 }
   0x2   :  { %20 = vsyncpa [#allocation9], 0 }
   0x3   :  { %21 = vsyncpa [#allocation4], 0 }
   0x4   :  { %22 = vsyncpa [#allocation12], 0  ;;  %s1126_s21 = smov [#allocation5]   ;;  %s984_s25 = scalar_lea.hbm %s1331_s3, 4096 }
   0x5   :  { %s44_s22 = sshll.u32 %s1126_s21, 4  ;;  %p985_p0 = scmp.ne.s32.totalorder %s1331_s3, %s984_s25  ;;  %s45_s22 = int_to_ptr.vmem [resolvable:$true] %s44_s22 }
   0x6   :  { %p988_p1 = scmp.lt.u32.totalorder %s984_s25, %s1331_s3 }
   0x8   :  { %p990_p2 = pnand %p988_p1, %p985_p0 }
   0xa   :  { %993 = shalt.err (!%p990_p2)
}
   0xb   :  { %s994_s30 = scalar_lea.vmem %s45_s22, 4096  ;;  %p999_p4 = scmp.lt.s32.totalorder %s45_s22, %s45_s22 }
   0xc   :  { %p995_p3 = scmp.ne.s32.totalorder %s45_s22, %s994_s30  ;;  %p1000_p5 = scmp.lt.s32.totalorder %s994_s30, %s994_s30 }
   0xe   :  { %p1001_p6 = por %p1000_p5, %p999_p4 }
  0x10   :  { %p1002_p7 = pnand %p1001_p6, %p995_p3 }
  0x12   :  { %1005 = shalt.err (!%p1002_p7)
}
  0x13   :  { %s1127_s13 = smov 128   ;;  %s1128_s14 = smov 8  }
  0x14   :  { %50 = dma.hbm_to_vmem [thread:$0]  %s1331_s3, 4096, %s45_s22, [#allocation6], %s1127_s13, %s1127_s13, %s1128_s14  }
  0x15   :  { %s1129_s17 = smov [#allocation2]   ;;  %s1006_s21 = scalar_lea.hbm %s1329_s1, 8192 }
  0x16   :  { %s30_s18 = sshll.u32 %s1129_s17, 4  ;;  %p1007_p8 = scmp.ne.s32.totalorder %s1329_s1, %s1006_s21  ;;  %s31_s18 = int_to_ptr.vmem [resolvable:$true] %s30_s18 }
  0x17   :  { %p1010_p9 = scmp.lt.u32.totalorder %s1006_s21, %s1329_s1 }
  0x19   :  { %p1012_p10 = pnand %p1010_p9, %p1007_p8 }
  0x1b   :  { %1015 = shalt.err (!%p1012_p10)
}
  0x1c   :  { %s1016_s27 = scalar_lea.vmem %s31_s18, 8192  ;;  %p1021_p12 = scmp.lt.s32.totalorder %s31_s18, %s31_s18 }
  0x1d   :  { %p1017_p11 = scmp.ne.s32.totalorder %s31_s18, %s1016_s27  ;;  %p1022_p13 = scmp.lt.s32.totalorder %s1016_s27, %s1016_s27 }
  0x1f   :  { %p1023_p0 = por %p1022_p13, %p1021_p12 }
  0x21   :  { %p1024_p1 = pnand %p1023_p0, %p1017_p11 }
  0x23   :  { %1027 = shalt.err (!%p1024_p1)
}
  0x24   :  { %s1130_s3 = smov 256   ;;  %s1131_s22 = smov 16  }
  0x25   :  { %36 = dma.hbm_to_vmem [thread:$0]  %s1329_s1, 8192, %s31_s18, [#allocation3], %s1130_s3, %s1130_s3, %s1131_s22  }
  0x26   :  { %s1132_s30 = smov [#allocation7]   ;;  %s1133_s14 = smov [#allocation8]  }
  0x27   :  { %s60_s13 = sshll.u32 %s1132_s30, 4  ;;  %s74_s15 = sshll.u32 %s1133_s14, 4  ;;  %s61_s13 = int_to_ptr.vmem [resolvable:$true] %s60_s13  ;;  %s1230_s15 = int_to_ptr.vmem [resolvable:$true] %s74_s15 }
  0x28   :  { %s1028_s19 = scalar_lea.hbm %s1334_s6, 4096 }
  0x29   :  { %p1029_p2 = scmp.ne.s32.totalorder %s1334_s6, %s1028_s19  ;;  %p1032_p3 = scmp.lt.u32.totalorder %s1028_s19, %s1334_s6 }
  0x2b   :  { %p1034_p4 = pnand %p1032_p3, %p1029_p2 }
  0x2d   :  { %1037 = shalt.err (!%p1034_p4)
}
  0x2e   :  { %s1038_s1 = scalar_lea.vmem %s61_s13, 4096  ;;  %p1043_p6 = scmp.lt.s32.totalorder %s61_s13, %s61_s13 }
  0x2f   :  { %p1039_p5 = scmp.ne.s32.totalorder %s61_s13, %s1038_s1  ;;  %p1044_p7 = scmp.lt.s32.totalorder %s1038_s1, %s1038_s1 }
  0x31   :  { %p1045_p8 = por %p1044_p7, %p1043_p6 }
  0x33   :  { %p1046_p9 = pnand %p1045_p8, %p1039_p5 }
  0x35   :  { %1049 = shalt.err (!%p1046_p9)
}
  0x36   :  { %66 = dma.hbm_to_vmem [thread:$0]  %s1334_s6, 4096, %s61_s13, [#allocation6], %s1130_s3, %s1130_s3, %s1131_s22  }
  0x37   :  { %s1050_s28 = scalar_lea.hbm %s1336_s8, 8192 }
  0x38   :  { %p1051_p10 = scmp.ne.s32.totalorder %s1336_s8, %s1050_s28  ;;  %p1054_p11 = scmp.lt.u32.totalorder %s1050_s28, %s1336_s8 }
  0x3a   :  { %p1056_p12 = pnand %p1054_p11, %p1051_p10 }
  0x3c   :  { %1059 = shalt.err (!%p1056_p12)
}
  0x3d   :  { %s1060_s17 = scalar_lea.vmem %s1230_s15, 8192  ;;  %p1065_p0 = scmp.lt.s32.totalorder %s1230_s15, %s1230_s15 }
  0x3e   :  { %p1061_p13 = scmp.ne.s32.totalorder %s1230_s15, %s1060_s17  ;;  %p1066_p1 = scmp.lt.s32.totalorder %s1060_s17, %s1060_s17 }
  0x40   :  { %p1067_p2 = por %p1066_p1, %p1065_p0 }
  0x42   :  { %p1068_p3 = pnand %p1067_p2, %p1061_p13 }
  0x44   :  { %1071 = shalt.err (!%p1068_p3)
}
  0x45   :  { %80 = dma.hbm_to_vmem [thread:$0]  %s1336_s8, 8192, %s1230_s15, [#allocation9], %s1130_s3, %s1130_s3, %s1131_s22  }
  0x46   :  { %1116 = dma.done.wait [#allocation3], 8192  }
  0x47   :  { %1117 = vsyncadd [#allocation3], 4294959104 }
  0x48   :  { %1118 = dma.done.wait [#allocation6], 8192  }
  0x49   :  { %1119 = vsyncadd [#allocation6], 4294959104 }
  0x4a   :  { %1120 = dma.done.wait [#allocation9], 8192  }
  0x4b   :  { %1121 = vsyncadd [#allocation9], 4294959104  ;;  %v98_v0 = vld [vmem:[#allocation2 + $0x8] sm:$0xff]  ;;  %v100_v1 = vld [vmem:[#allocation2 + $0x18] sm:$0xff]  ;;  %vm1135_vm0 = vmmov 0   ;;  %vm357_vm1 = vcmask 64512  }
  0x4c   :  { %v97_v2 = vld [vmem:[#allocation2] sm:$0xff]  ;;  %v780_v3 = vpack.c.bf16 %v100_v1, %v98_v0  ;;  %v99_v4 = vld [vmem:[#allocation2 + $0x10] sm:$0xff]  ;;  %v102_v5 = vld [vmem:[#allocation2 + $0x28] sm:$0xff]  ;;  %s1136_s24 = smov [#allocation10]   ;;  %s1137_s18 = smov [#allocation11]  }
  0x4d   :  { %v104_v6 = vld [vmem:[#allocation2 + $0x38] sm:$0xff]  ;;  %v782_v7 = vpack.c.bf16 %v99_v4, %v97_v2  ;;  %v101_v9 = vld [vmem:[#allocation2 + $0x20] sm:$0xff]  ;;  %v103_v10 = vld [vmem:[#allocation2 + $0x30] sm:$0xff]  ;;  %s709_s1 = sshll.u32 %s1136_s24, 4  ;;  %s719_s25 = sshll.u32 %s1137_s18, 4  ;;  %s710_s1 = int_to_ptr.vmem [resolvable:$true] %s709_s1  ;;  %s720_s25 = int_to_ptr.vmem [resolvable:$true] %s719_s25 }
  0x4e   :  { %v784_v8 = vpack.c.bf16 %v104_v6, %v102_v5  ;;  %v106_v11 = vld [vmem:[#allocation2 + $0x48] sm:$0xff]  ;;  %781 = vmatprep.subr.bf16.mxu0 %v780_v3  ;;  %v108_v12 = vld [vmem:[#allocation2 + $0x58] sm:$0xff]  ;;  %v786_v13 = vpack.c.bf16 %v103_v10, %v101_v9  ;;  %v105_v15 = vld [vmem:[#allocation2 + $0x40] sm:$0xff]  ;;  %s1072_s26 = scalar_lea.vmem %s710_s1, 128  ;;  %p1077_p5 = scmp.lt.s32.totalorder %s710_s1, %s710_s1 }
  0x4f   :  { %783 = vmatpush1.bf16.msra.mxu0 %v782_v7  ;;  %v788_v14 = vpack.c.bf16 %v108_v12, %v106_v11  ;;  %v107_v16 = vld [vmem:[#allocation2 + $0x50] sm:$0xff]  ;;  %v110_v17 = vld [vmem:[#allocation2 + $0x68] sm:$0xff]  ;;  %v112_v18 = vld [vmem:[#allocation2 + $0x78] sm:$0xff]  ;;  %p1073_p4 = scmp.ne.s32.totalorder %s710_s1, %s1072_s26  ;;  %p1078_p6 = scmp.lt.s32.totalorder %s1072_s26, %s1072_s26 }
  0x50   :  { %785 = vmatprep.subr.bf16.mxu0 %v784_v8  ;;  %v790_v19 = vpack.c.bf16 %v107_v16, %v105_v15  ;;  %v792_v20 = vpack.c.bf16 %v112_v18, %v110_v17  ;;  %v109_v21 = vld [vmem:[#allocation2 + $0x60] sm:$0xff]  ;;  %v111_v22 = vld [vmem:[#allocation2 + $0x70] sm:$0xff]  ;;  %v114_v23 = vld [vmem:[#allocation2 + $0x88] sm:$0xff] }
  0x51   :  { %v116_v24 = vld [vmem:[#allocation2 + $0x98] sm:$0xff]  ;;  %v794_v25 = vpack.c.bf16 %v111_v22, %v109_v21  ;;  %v113_v27 = vld [vmem:[#allocation2 + $0x80] sm:$0xff]  ;;  %v115_v28 = vld [vmem:[#allocation2 + $0x90] sm:$0xff]  ;;  %p1079_p7 = por %p1078_p6, %p1077_p5 }
  0x52   :  { %v796_v26 = vpack.c.bf16 %v116_v24, %v114_v23  ;;  %v118_v29 = vld [vmem:[#allocation2 + $0xa8] sm:$0xff]  ;;  %v120_v30 = vld [vmem:[#allocation2 + $0xb8] sm:$0xff]  ;;  %v798_v31 = vpack.c.bf16 %v115_v28, %v113_v27  ;;  %v117_v33 = vld [vmem:[#allocation2 + $0xa0] sm:$0xff] }
  0x53   :  { %787 = vmatpush1.bf16.msra.mxu0 %v786_v13  ;;  %v800_v32 = vpack.c.bf16 %v120_v30, %v118_v29  ;;  %v119_v34 = vld [vmem:[#allocation2 + $0xb0] sm:$0xff]  ;;  %v122_v35 = vld [vmem:[#allocation2 + $0xc8] sm:$0xff]  ;;  %v124_v36 = vld [vmem:[#allocation2 + $0xd8] sm:$0xff]  ;;  %p1080_p8 = pnand %p1079_p7, %p1073_p4 }
  0x54   :  { %789 = vmatprep.subr.bf16.mxu0 %v788_v14  ;;  %v802_v37 = vpack.c.bf16 %v119_v34, %v117_v33  ;;  %v121_v38 = vld [vmem:[#allocation2 + $0xc0] sm:$0xff]  ;;  %v123_v39 = vld [vmem:[#allocation2 + $0xd0] sm:$0xff]  ;;  %v804_v40 = vpack.c.bf16 %v124_v36, %v122_v35  ;;  %v126_v41 = vld [vmem:[#allocation2 + $0xe8] sm:$0xff] }
  0x55   :  { %v128_v42 = vld [vmem:[#allocation2 + $0xf8] sm:$0xff]  ;;  %v96_v43 = vld [vmem:[%s1328_s0 + $0x8] sm:$0xff]  ;;  %v262_v44 = vld [vmem:[#allocation5 + $0x80] sm:$0xff]  ;;  %v806_v51 = vpack.c.bf16 %v123_v39, %v121_v38 }
  0x56   :  { %237 = vmatprep.mubr.f32.mxu0 %v96_v43  ;;  %v263_v45 = vld [vmem:[#allocation5 + $0x88] sm:$0xff]  ;;  %v246_v46 = vld [vmem:[#allocation5] sm:$0xff]  ;;  %v264_v49 = vld [vmem:[#allocation5 + $0x90] sm:$0xff]  ;;  %v808_v57 = vpack.c.bf16 %v128_v42, %v126_v41 }
  0x57   :  { %791 = vmatpush1.bf16.msra.mxu0 %v790_v19  ;;  %v844_v47 = vpack.c.bf16 %v263_v45, %v262_v44  ;;  %v247_v48 = vld [vmem:[#allocation5 + $0x8] sm:$0xff]  ;;  %v265_v50 = vld [vmem:[#allocation5 + $0x98] sm:$0xff]  ;;  %v248_v54 = vld [vmem:[#allocation5 + $0x10] sm:$0xff] }
  0x58   :  { %793 = vmatprep.subr.bf16.mxu0 %v792_v20  ;;  %v846_v52 = vpack.c.bf16 %v247_v48, %v246_v46  ;;  %v848_v53 = vpack.c.bf16 %v265_v50, %v264_v49  ;;  %v249_v55 = vld [vmem:[#allocation5 + $0x18] sm:$0xff]  ;;  %v266_v56 = vld [vmem:[#allocation5 + $0xa0] sm:$0xff]  ;;  %v127_v59 = vld [vmem:[#allocation2 + $0xf0] sm:$0xff] }
  0x59   :  { %v125_v58 = vld [vmem:[#allocation2 + $0xe0] sm:$0xff]  ;;  %845 = vmatprep.subr.bf16.mxu1 %v844_v47  ;;  %v267_v60 = vld [vmem:[#allocation5 + $0xa8] sm:$0xff]  ;;  %v132_v62 = vld [vmem:[#allocation2 + $0x118] sm:$0xff]  ;;  %v850_v63 = vpack.c.bf16 %v249_v55, %v248_v54 }
  0x5a   :  { %v130_v61 = vld [vmem:[#allocation2 + $0x108] sm:$0xff]  ;;  %847 = vmatpush3.bf16.msra.mxu1 %v846_v52  ;;  %v852_v0 = vpack.c.bf16 %v267_v60, %v266_v56  ;;  %v250_v1 = vld [vmem:[#allocation5 + $0x20] sm:$0xff]  ;;  %v810_v3 = vpack.c.bf16 %v127_v59, %v125_v58  ;;  %v268_v4 = vld [vmem:[#allocation5 + $0xb0] sm:$0xff] }
  0x5b   :  { %795 = vmatpush1.bf16.msra.mxu0 %v794_v25  ;;  %849 = vmatprep.subr.bf16.mxu1 %v848_v53  ;;  %v251_v2 = vld [vmem:[#allocation5 + $0x28] sm:$0xff]  ;;  %v269_v5 = vld [vmem:[#allocation5 + $0xb8] sm:$0xff]  ;;  %v812_v6 = vpack.c.bf16 %v132_v62, %v130_v61  ;;  %v129_v7 = vld [vmem:[#allocation2 + $0x100] sm:$0xff] }
  0x5c   :  { %797 = vmatprep.subr.bf16.mxu0 %v796_v26  ;;  %v131_v8 = vld [vmem:[#allocation2 + $0x110] sm:$0xff]  ;;  %v134_v9 = vld [vmem:[#allocation2 + $0x128] sm:$0xff]  ;;  %v136_v10 = vld [vmem:[#allocation2 + $0x138] sm:$0xff]  ;;  %v854_v11 = vpack.c.bf16 %v251_v2, %v250_v1  ;;  %v856_v12 = vpack.c.bf16 %v269_v5, %v268_v4 }
  0x5d   :  { %v252_v13 = vld [vmem:[#allocation5 + $0x30] sm:$0xff]  ;;  %v253_v14 = vld [vmem:[#allocation5 + $0x38] sm:$0xff]  ;;  %v814_v15 = vpack.c.bf16 %v131_v8, %v129_v7  ;;  %v270_v16 = vld [vmem:[#allocation5 + $0xc0] sm:$0xff]  ;;  %v816_v18 = vpack.c.bf16 %v136_v10, %v134_v9 }
  0x5e   :  { %851 = vmatpush3.bf16.msra.mxu1 %v850_v63  ;;  %v271_v17 = vld [vmem:[#allocation5 + $0xc8] sm:$0xff]  ;;  %v133_v19 = vld [vmem:[#allocation2 + $0x120] sm:$0xff]  ;;  %v135_v20 = vld [vmem:[#allocation2 + $0x130] sm:$0xff]  ;;  %v858_v23 = vpack.c.bf16 %v253_v14, %v252_v13 }
  0x5f   :  { %799 = vmatpush1.bf16.msra.mxu0 %v798_v31  ;;  %853 = vmatprep.subr.bf16.mxu1 %v852_v0  ;;  %v138_v21 = vld [vmem:[#allocation2 + $0x148] sm:$0xff]  ;;  %v140_v22 = vld [vmem:[#allocation2 + $0x158] sm:$0xff]  ;;  %v860_v24 = vpack.c.bf16 %v271_v17, %v270_v16  ;;  %v254_v25 = vld [vmem:[#allocation5 + $0x40] sm:$0xff]  ;;  %v818_v27 = vpack.c.bf16 %v135_v20, %v133_v19 }
  0x60   :  { %801 = vmatprep.subr.bf16.mxu0 %v800_v32  ;;  %v255_v26 = vld [vmem:[#allocation5 + $0x48] sm:$0xff]  ;;  %v272_v28 = vld [vmem:[#allocation5 + $0xd0] sm:$0xff]  ;;  %v273_v29 = vld [vmem:[#allocation5 + $0xd8] sm:$0xff]  ;;  %v820_v30 = vpack.c.bf16 %v140_v22, %v138_v21 }
  0x61   :  { %v137_v31 = vld [vmem:[#allocation2 + $0x140] sm:$0xff]  ;;  %v139_v32 = vld [vmem:[#allocation2 + $0x150] sm:$0xff]  ;;  %v142_v33 = vld [vmem:[#allocation2 + $0x168] sm:$0xff]  ;;  %v862_v35 = vpack.c.bf16 %v255_v26, %v254_v25  ;;  %v864_v36 = vpack.c.bf16 %v273_v29, %v272_v28 }
  0x62   :  { %855 = vmatpush3.bf16.msra.mxu1 %v854_v11  ;;  %v144_v34 = vld [vmem:[#allocation2 + $0x178] sm:$0xff]  ;;  %v822_v39 = vpack.c.bf16 %v139_v32, %v137_v31  ;;  %v275_v41 = vld [vmem:[#allocation5 + $0xe8] sm:$0xff]  ;;  %v141_v43 = vld [vmem:[#allocation2 + $0x160] sm:$0xff]  ;;  %v1134_v31 = vmov 0.0  }
  0x63   :  { %803 = vmatpush1.bf16.msra.mxu0 %v802_v37  ;;  %857 = vmatprep.subr.bf16.mxu1 %v856_v12  ;;  %v256_v37 = vld [vmem:[#allocation5 + $0x50] sm:$0xff]  ;;  %v257_v38 = vld [vmem:[#allocation5 + $0x58] sm:$0xff]  ;;  %v824_v42 = vpack.c.bf16 %v144_v34, %v142_v33  ;;  %v146_v45 = vld [vmem:[#allocation2 + $0x188] sm:$0xff] }
  0x64   :  { %805 = vmatprep.subr.bf16.mxu0 %v804_v40  ;;  %v274_v40 = vld [vmem:[#allocation5 + $0xe0] sm:$0xff]  ;;  %v143_v44 = vld [vmem:[#allocation2 + $0x170] sm:$0xff]  ;;  %v148_v46 = vld [vmem:[#allocation2 + $0x198] sm:$0xff]  ;;  %v866_v47 = vpack.c.bf16 %v257_v38, %v256_v37 }
  0x65   :  { %v868_v48 = vpack.c.bf16 %v275_v41, %v274_v40  ;;  %v826_v49 = vpack.c.bf16 %v143_v44, %v141_v43  ;;  %v828_v50 = vpack.c.bf16 %v148_v46, %v146_v45  ;;  %v147_v52 = vld [vmem:[#allocation2 + $0x190] sm:$0xff]  ;;  %v150_v53 = vld [vmem:[#allocation2 + $0x1a8] sm:$0xff]  ;;  %v152_v54 = vld [vmem:[#allocation2 + $0x1b8] sm:$0xff] }
  0x66   :  { %859 = vmatpush3.bf16.msra.mxu1 %v858_v23  ;;  %v832_v56 = vpack.c.bf16 %v152_v54, %v150_v53  ;;  %v151_v58 = vld [vmem:[#allocation2 + $0x1b0] sm:$0xff]  ;;  %v154_v59 = vld [vmem:[#allocation2 + $0x1c8] sm:$0xff]  ;;  %v156_v60 = vld [vmem:[#allocation2 + $0x1d8] sm:$0xff] }
  0x67   :  { %807 = vmatpush1.bf16.msra.mxu0 %v806_v51  ;;  %861 = vmatprep.subr.bf16.mxu1 %v860_v24  ;;  %v145_v51 = vld [vmem:[#allocation2 + $0x180] sm:$0xff]  ;;  %v836_v62 = vpack.c.bf16 %v156_v60, %v154_v59  ;;  %v155_v0 = vld [vmem:[#allocation2 + $0x1d0] sm:$0xff]  ;;  %v158_v1 = vld [vmem:[#allocation2 + $0x1e8] sm:$0xff] }
  0x68   :  { %809 = vmatprep.subr.bf16.mxu0 %v808_v57  ;;  %v830_v55 = vpack.c.bf16 %v147_v52, %v145_v51  ;;  %v149_v57 = vld [vmem:[#allocation2 + $0x1a0] sm:$0xff]  ;;  %v160_v2 = vld [vmem:[#allocation2 + $0x1f8] sm:$0xff]  ;;  %v259_v10 = vld [vmem:[#allocation5 + $0x68] sm:$0xff] }
  0x69   :  { %v834_v61 = vpack.c.bf16 %v151_v58, %v149_v57  ;;  %v153_v63 = vld [vmem:[#allocation2 + $0x1c0] sm:$0xff]  ;;  %v840_v4 = vpack.c.bf16 %v160_v2, %v158_v1  ;;  %v276_v12 = vld [vmem:[#allocation5 + $0xf0] sm:$0xff]  ;;  %v277_v13 = vld [vmem:[#allocation5 + $0xf8] sm:$0xff] }
  0x6a   :  { %863 = vmatpush3.bf16.msra.mxu1 %v862_v35  ;;  %v157_v5 = vld [vmem:[#allocation2 + $0x1e0] sm:$0xff]  ;;  %v872_v14 = vpack.c.bf16 %v277_v13, %v276_v12  ;;  %v261_v16 = vld [vmem:[#allocation5 + $0x78] sm:$0xff]  ;;  %v436_v41 = vld [vmem:[#allocation7 + $0x28] sm:$0xff] }
  0x6b   :  { %811 = vmatpush1.bf16.msra.mxu0 %v810_v3  ;;  %865 = vmatprep.subr.bf16.mxu1 %v864_v36  ;;  %v838_v3 = vpack.c.bf16 %v155_v0, %v153_v63  ;;  %v95_v8 = vld [vmem:[%s1328_s0] sm:$0xff]  ;;  %v432_v36 = vld [vmem:[#allocation7 + $0x8] sm:$0xff]  ;;  %v434_v37 = vld [vmem:[#allocation7 + $0x18] sm:$0xff] }
  0x6c   :  { %813 = vmatprep.subr.bf16.mxu0 %v812_v6  ;;  %v159_v6 = vld [vmem:[#allocation2 + $0x1f0] sm:$0xff]  ;;  %v258_v9 = vld [vmem:[#allocation5 + $0x60] sm:$0xff]  ;;  %v876_v43 = vpack.c.bf16 %v434_v37, %v432_v36  ;;  %v442_v51 = vld [vmem:[#allocation7 + $0x58] sm:$0xff] }
  0x6d   :  { %v842_v7 = vpack.c.bf16 %v159_v6, %v157_v5  ;;  %v870_v11 = vpack.c.bf16 %v259_v10, %v258_v9  ;;  %v161_v21 = vld [vmem:[%s1330_s2] sm:$0x3]  ;;  %v446_v57 = vld [vmem:[#allocation7 + $0x78] sm:$0xff]  ;;  %v453_v9 = vld [vmem:[#allocation7 + $0xb0] sm:$0xff] }
  0x6e   :  { %867 = vmatpush3.bf16.msra.mxu1 %v866_v47  ;;  %v736_v33 = vld [vmem:[%s1332_s4] ss:$0 sm:$0xff]  ;;  %v450_v63 = vld [vmem:[#allocation7 + $0x98] sm:$0xff]  ;;  %v456_v10 = vld [vmem:[#allocation7 + $0xc8] sm:$0xff] }
  0x6f   :  { %815 = vmatpush1.bf16.msra.mxu0 %v814_v15  ;;  %869 = vmatprep.subr.bf16.mxu1 %v868_v48  ;;  %v260_v15 = vld [vmem:[#allocation5 + $0x70] sm:$0xff]  ;;  %v431_v38 = vld [vmem:[#allocation7] sm:$0xff]  ;;  %v454_v5 = vld [vmem:[#allocation7 + $0xb8] sm:$0xff] }
  0x70   :  { %817 = vmatprep.subr.bf16.mxu0 %v816_v18  ;;  %v874_v17 = vpack.c.bf16 %v261_v16, %v260_v15  ;;  %v163_v18 = vlaneseq  ;;  %v356_v45 = vld [vmem:[%s1333_s5] sm:$0xff]  ;;  %v457_v15 = vld [vmem:[#allocation7 + $0xd0] sm:$0xff]  ;;  %v460_v16 = vld [vmem:[#allocation7 + $0xe8] sm:$0xff] }
  0x71   :  { %v435_v48 = vld [vmem:[#allocation7 + $0x20] sm:$0xff]  ;;  %v557_v36 = vld [vmem:[#allocation8 + $0x48] sm:$0xff]  ;;  %v559_v37 = vld [vmem:[#allocation8 + $0x58] sm:$0xff] }
  0x72   :  { %871 = vmatpush3.bf16.msra.mxu1 %v870_v11  ;;  %v164_v19 = vshrl.u32 %v163_v18, 7  ;;  %v439_v54 = vld [vmem:[#allocation7 + $0x40] sm:$0xff]  ;;  %v458_v11 = vld [vmem:[#allocation7 + $0xd8] sm:$0xff] }
  0x73   :  { %819 = vmatpush1.bf16.msra.mxu0 %v818_v27  ;;  %873 = vmatprep.subr.bf16.mxu1 %v872_v14  ;;  %v443_v60 = vld [vmem:[#allocation7 + $0x60] sm:$0xff]  ;;  %v900_v13 = vpack.c.bf16 %v458_v11, %v456_v10 }
  0x74   :  { %821 = vmatprep.subr.bf16.mxu0 %v820_v30  ;;  %v1273_v20 = vsub.s32 0, %v164_v19  ;;  %v1278_v22 = vsub.s32 1, %v164_v19  ;;  %v447_v2 = vld [vmem:[#allocation7 + $0x80] sm:$0xff] }
  0x75   :  { %v455_v14 = vld [vmem:[#allocation7 + $0xc0] sm:$0xff] }
  0x76   :  { %875 = vmatpush3.bf16.msra.mxu1 %v874_v17  ;;  %v166_v23 = vrot.slane %v161_v21, %v1273_v20  ;;  %v170_v24 = vrot.slane %v161_v21, %v1278_v22  ;;  %v462_v17 = vld [vmem:[#allocation7 + $0xf8] sm:$0xff]  ;;  %v902_v18 = vpack.c.bf16 %v457_v15, %v455_v14  ;;  %v459_v21 = vld [vmem:[#allocation7 + $0xe0] sm:$0xff]  ;;  %v585_v14 = vld [vmem:[#allocation8 + $0x128] sm:$0xff] }
  0x77   :  { %823 = vmatpush1.bf16.msra.mxu0 %v822_v39  ;;  %775 = vmatprep.subr.mxu1 %v1134_v31  ;;  %v433_v39 = vld [vmem:[#allocation7 + $0x10] sm:$0xff]  ;;  %v904_v19 = vpack.c.bf16 %v462_v17, %v460_v16  ;;  %v587_v15 = vld [vmem:[#allocation8 + $0x138] sm:$0xff] }
  0x78   :  { %825 = vmatprep.subr.bf16.mxu0 %v824_v42  ;;  %v438_v42 = vld [vmem:[#allocation7 + $0x38] sm:$0xff]  ;;  %v878_v46 = vpack.c.bf16 %v433_v39, %v431_v38  ;;  %v916_v39 = vpack.c.bf16 %v559_v37, %v557_v36  ;;  %v944_v17 = vpack.c.bf16 %v587_v15, %v585_v14 }
  0x79   :  { %v880_v47 = vpack.c.bf16 %v438_v42, %v436_v41  ;;  %v558_v41 = vld [vmem:[#allocation8 + $0x50] sm:$0xff]  ;;  %v561_v42 = vld [vmem:[#allocation8 + $0x68] sm:$0xff] }
  0x7b   :  { %827 = vmatpush1.bf16.msra.mxu0 %v826_v49  ;;  %v437_v49 = vld [vmem:[#allocation7 + $0x30] sm:$0xff] }
  0x7c   :  { %829 = vmatprep.subr.bf16.mxu0 %v828_v50  ;;  %v440_v50 = vld [vmem:[#allocation7 + $0x48] sm:$0xff]  ;;  %v882_v52 = vpack.c.bf16 %v437_v49, %v435_v48  ;;  %v567_v49 = vld [vmem:[#allocation8 + $0x98] sm:$0xff] }
  0x7d   :  { %v884_v53 = vpack.c.bf16 %v442_v51, %v440_v50  ;;  %v565_v48 = vld [vmem:[#allocation8 + $0x88] sm:$0xff] }
  0x7e   :  { %v924_v51 = vpack.c.bf16 %v567_v49, %v565_v48 }
  0x7f   :  { %831 = vmatpush1.bf16.msra.mxu0 %v830_v55  ;;  %v441_v55 = vld [vmem:[#allocation7 + $0x50] sm:$0xff] }
  0x80   :  { %833 = vmatprep.subr.bf16.mxu0 %v832_v56  ;;  %v444_v56 = vld [vmem:[#allocation7 + $0x68] sm:$0xff]  ;;  %v886_v58 = vpack.c.bf16 %v441_v55, %v439_v54  ;;  %v571_v55 = vld [vmem:[#allocation8 + $0xb8] sm:$0xff] }
  0x81   :  { %v888_v59 = vpack.c.bf16 %v446_v57, %v444_v56  ;;  %v569_v54 = vld [vmem:[#allocation8 + $0xa8] sm:$0xff] }
  0x82   :  { %v928_v57 = vpack.c.bf16 %v571_v55, %v569_v54  ;;  %v609_v55 = vld [vmem:[#allocation8 + $0x1e8] sm:$0xff] }
  0x83   :  { %835 = vmatpush1.bf16.msra.mxu0 %v834_v61  ;;  %v445_v61 = vld [vmem:[#allocation7 + $0x70] sm:$0xff] }
  0x84   :  { %837 = vmatprep.subr.bf16.mxu0 %v836_v62  ;;  %v448_v62 = vld [vmem:[#allocation7 + $0x88] sm:$0xff]  ;;  %v890_v0 = vpack.c.bf16 %v445_v61, %v443_v60  ;;  %v575_v61 = vld [vmem:[#allocation8 + $0xd8] sm:$0xff] }
  0x85   :  { %v892_v1 = vpack.c.bf16 %v450_v63, %v448_v62  ;;  %v573_v60 = vld [vmem:[#allocation8 + $0xc8] sm:$0xff] }
  0x86   :  { %v932_v63 = vpack.c.bf16 %v575_v61, %v573_v60  ;;  %v463_v61 = vld [vmem:[%s1335_s7] sm:$0x3] }
  0x87   :  { %839 = vmatpush1.bf16.msra.mxu0 %v838_v3  ;;  %v449_v3 = vld [vmem:[#allocation7 + $0x90] sm:$0xff] }
  0x88   :  { %841 = vmatprep.subr.bf16.mxu0 %v840_v4  ;;  %v452_v4 = vld [vmem:[#allocation7 + $0xa8] sm:$0xff]  ;;  %v894_v6 = vpack.c.bf16 %v449_v3, %v447_v2  ;;  %v579_v3 = vld [vmem:[#allocation8 + $0xf8] sm:$0xff] }
  0x89   :  { %v577_v2 = vld [vmem:[#allocation8 + $0xe8] sm:$0xff] }
  0x8b   :  { %843 = vmatpush1.bf16.msra.mxu0 %v842_v7  ;;  %v896_v7 = vpack.c.bf16 %v454_v5, %v452_v4  ;;  %v936_v5 = vpack.c.bf16 %v579_v3, %v577_v2 }
  0x8e   :  { %238 = vmatmul.mubr.f32.vlgmr.msra.gmra.mrb[0].mxu0 %v95_v8  ;;  %v451_v8 = vld [vmem:[#allocation7 + $0xa0] sm:$0xff] }
  0x8f   :  { %v898_v12 = vpack.c.bf16 %v453_v9, %v451_v8  ;;  %v581_v8 = vld [vmem:[#allocation8 + $0x108] sm:$0xff]  ;;  %v583_v9 = vld [vmem:[#allocation8 + $0x118] sm:$0xff] }
  0x90   :  { %v940_v11 = vpack.c.bf16 %v583_v9, %v581_v8 }
 0x161   :  { %v239_v25 = vpop.f32.mrb[0].mxu0 }
 0x162   :  { %v240_v26 = vadd.f32 %v239_v25, %v166_v23  ;;  %v241_v27 = vpop.f32.mrb[1].mxu0  ;;  %v461_v23 = vld [vmem:[#allocation7 + $0xf0] sm:$0xff]  ;;  %v549_v25 = vld [vmem:[#allocation8 + $0x8] sm:$0xff] }
 0x163   :  { %v242_v28 = vadd.f32 %v241_v27, %v170_v24  ;;  %v906_v24 = vpack.c.bf16 %v461_v23, %v459_v21  ;;  %v548_v27 = vld [vmem:[#allocation8] sm:$0xff]  ;;  %v589_v21 = vld [vmem:[#allocation8 + $0x148] sm:$0xff]  ;;  %v591_v23 = vld [vmem:[#allocation8 + $0x158] sm:$0xff] }
 0x164   :  { %v244_v30 = vmax.f32 %v240_v26, 0.0  ;;  %v551_v26 = vld [vmem:[#allocation8 + $0x18] sm:$0xff] }
 0x165   :  { %v245_v29 = vmax.f32 %v242_v28, 0.0  ;;  %v908_v28 = vpack.c.bf16 %v551_v26, %v549_v25  ;;  %v948_v25 = vpack.c.bf16 %v591_v23, %v589_v21  ;;  %v588_v26 = vld [vmem:[#allocation8 + $0x140] sm:$0xff] }
 0x167   :  { %349 = vmatprep.mubr.f32.mxu1 %v245_v29  ;;  %v550_v29 = vld [vmem:[#allocation8 + $0x10] sm:$0xff]  ;;  %909 = vmatprep.subr.bf16.mxu0 %v908_v28  ;;  %v593_v28 = vld [vmem:[#allocation8 + $0x168] sm:$0xff] }
 0x168   :  { %350 = vmatmul.mubr.f32.vlgmr.msra.gmra.mrb[0].mxu1 %v244_v30  ;;  %v553_v30 = vld [vmem:[#allocation8 + $0x28] sm:$0xff] }
 0x169   :  { %777 = vmatprep.mubr.msk.f32.mxu1 %vm1135_vm0, %v1134_v31 }
 0x23b   :  { %v770_v32 = vpop.f32.mrb[0].mxu1 }
 0x23c   :  { %v771_v34 = vpop.f32.mrb[1].mxu1 }
 0x23d   :  { %v772_v35 = vadd.f32 %v771_v34, %v770_v32  ;;  %v910_v32 = vpack.c.bf16 %v550_v29, %v548_v27  ;;  %v552_v34 = vld [vmem:[#allocation8 + $0x20] sm:$0xff]  ;;  %v590_v27 = vld [vmem:[#allocation8 + $0x150] sm:$0xff]  ;;  %v595_v29 = vld [vmem:[#allocation8 + $0x178] sm:$0xff] }
 0x23f   :  { %v352_v40 = vadd.f32 %v772_v35, %v736_v33  ;;  %v554_v35 = vld [vmem:[#allocation8 + $0x30] sm:$0xff]  ;;  %911 = vmatpush1.bf16.msra.mxu0 %v910_v32  ;;  %v592_v32 = vld [vmem:[#allocation8 + $0x160] sm:$0xff] }
 0x240   :  { %v914_v38 = vpack.c.bf16 %v554_v35, %v552_v34  ;;  %v597_v34 = vld [vmem:[#allocation8 + $0x188] sm:$0xff]  ;;  %v599_v35 = vld [vmem:[#allocation8 + $0x198] sm:$0xff] }
 0x241   :  { %v355_v44 = vmax.f32 %v352_v40, 0.0  ;;  %v556_v40 = vld [vmem:[#allocation8 + $0x40] sm:$0xff]  ;;  %v956_v37 = vpack.c.bf16 %v599_v35, %v597_v34 }
 0x243   :  { %699 = vst [vmem:[#allocation10] sm:$0xff] %v355_v44  ;;  %776 = vmatpush3.msra.mxu1 %v355_v44  ;;  %v918_v44 = vpack.c.bf16 %v558_v41, %v556_v40  ;;  %v601_v40 = vld [vmem:[#allocation8 + $0x1a8] sm:$0xff]  ;;  %v603_v41 = vld [vmem:[#allocation8 + $0x1b8] sm:$0xff] }
 0x244   :  { %778 = vmatmul.mubr.msk.f32.vlgmr.msra.gmra.mrb[2].mxu1 %vm357_vm1, %v356_v45  ;;  %877 = vmatprep.subr.bf16.mxu1 %v876_v43  ;;  %v563_v43 = vld [vmem:[#allocation8 + $0x78] sm:$0xff] }
 0x245   :  { %879 = vmatpush1.bf16.msra.mxu1 %v878_v46  ;;  %539 = vmatprep.mubr.f32.mxu1 %v1134_v31  ;;  %v555_v31 = vld [vmem:[#allocation8 + $0x38] sm:$0xff]  ;;  %v920_v45 = vpack.c.bf16 %v563_v43, %v561_v42  ;;  %v560_v46 = vld [vmem:[#allocation8 + $0x60] sm:$0xff]  ;;  %v960_v43 = vpack.c.bf16 %v603_v41, %v601_v40 }
 0x246   :  { %881 = vmatprep.subr.bf16.mxu1 %v880_v47  ;;  %v912_v33 = vpack.c.bf16 %v555_v31, %v553_v30  ;;  %v562_v47 = vld [vmem:[#allocation8 + $0x70] sm:$0xff]  ;;  %v950_v30 = vpack.c.bf16 %v590_v27, %v588_v26  ;;  %v952_v31 = vpack.c.bf16 %v595_v29, %v593_v28 }
 0x247   :  { %v922_v50 = vpack.c.bf16 %v562_v47, %v560_v46  ;;  %v605_v46 = vld [vmem:[#allocation8 + $0x1c8] sm:$0xff]  ;;  %v607_v47 = vld [vmem:[#allocation8 + $0x1d8] sm:$0xff] }
 0x248   :  { %913 = vmatprep.subr.bf16.mxu0 %v912_v33  ;;  %v594_v33 = vld [vmem:[#allocation8 + $0x170] sm:$0xff]  ;;  %v964_v49 = vpack.c.bf16 %v607_v47, %v605_v46 }
 0x249   :  { %883 = vmatpush1.bf16.msra.mxu1 %v882_v52  ;;  %915 = vmatpush1.bf16.msra.mxu0 %v914_v38  ;;  %v564_v52 = vld [vmem:[#allocation8 + $0x80] sm:$0xff]  ;;  %v954_v36 = vpack.c.bf16 %v594_v33, %v592_v32 }
 0x24a   :  { %885 = vmatprep.subr.bf16.mxu1 %v884_v53  ;;  %917 = vmatprep.subr.bf16.mxu0 %v916_v39  ;;  %v566_v53 = vld [vmem:[#allocation8 + $0x90] sm:$0xff]  ;;  %v596_v38 = vld [vmem:[#allocation8 + $0x180] sm:$0xff] }
 0x24b   :  { %v926_v56 = vpack.c.bf16 %v566_v53, %v564_v52  ;;  %v598_v39 = vld [vmem:[#allocation8 + $0x190] sm:$0xff]  ;;  %v604_v52 = vld [vmem:[#allocation8 + $0x1c0] sm:$0xff] }
 0x24c   :  { %v958_v42 = vpack.c.bf16 %v598_v39, %v596_v38  ;;  %v606_v53 = vld [vmem:[#allocation8 + $0x1d0] sm:$0xff] }
 0x24d   :  { %887 = vmatpush1.bf16.msra.mxu1 %v886_v58  ;;  %919 = vmatpush1.bf16.msra.mxu0 %v918_v44  ;;  %v568_v58 = vld [vmem:[#allocation8 + $0xa0] sm:$0xff]  ;;  %v966_v54 = vpack.c.bf16 %v606_v53, %v604_v52 }
 0x24e   :  { %889 = vmatprep.subr.bf16.mxu1 %v888_v59  ;;  %921 = vmatprep.subr.bf16.mxu0 %v920_v45  ;;  %v570_v59 = vld [vmem:[#allocation8 + $0xb0] sm:$0xff]  ;;  %v600_v44 = vld [vmem:[#allocation8 + $0x1a0] sm:$0xff] }
 0x24f   :  { %v930_v62 = vpack.c.bf16 %v570_v59, %v568_v58  ;;  %v602_v45 = vld [vmem:[#allocation8 + $0x1b0] sm:$0xff]  ;;  %v608_v58 = vld [vmem:[#allocation8 + $0x1e0] sm:$0xff] }
 0x250   :  { %v962_v48 = vpack.c.bf16 %v602_v45, %v600_v44  ;;  %v610_v59 = vld [vmem:[#allocation8 + $0x1f0] sm:$0xff] }
 0x251   :  { %891 = vmatpush1.bf16.msra.mxu1 %v890_v0  ;;  %923 = vmatpush1.bf16.msra.mxu0 %v922_v50  ;;  %v572_v0 = vld [vmem:[#allocation8 + $0xc0] sm:$0xff]  ;;  %v970_v60 = vpack.c.bf16 %v610_v59, %v608_v58 }
 0x252   :  { %893 = vmatprep.subr.bf16.mxu1 %v892_v1  ;;  %925 = vmatprep.subr.bf16.mxu0 %v924_v51  ;;  %v574_v1 = vld [vmem:[#allocation8 + $0xd0] sm:$0xff] }
 0x253   :  { %v934_v4 = vpack.c.bf16 %v574_v1, %v572_v0 }
 0x255   :  { %895 = vmatpush1.bf16.msra.mxu1 %v894_v6  ;;  %927 = vmatpush1.bf16.msra.mxu0 %v926_v56  ;;  %v576_v6 = vld [vmem:[#allocation8 + $0xe0] sm:$0xff]  ;;  %v611_v56 = vld [vmem:[#allocation8 + $0x1f8] sm:$0xff] }
 0x256   :  { %897 = vmatprep.subr.bf16.mxu1 %v896_v7  ;;  %929 = vmatprep.subr.bf16.mxu0 %v928_v57  ;;  %v578_v7 = vld [vmem:[#allocation8 + $0xf0] sm:$0xff]  ;;  %v968_v57 = vpack.c.bf16 %v611_v56, %v609_v55 }
 0x257   :  { %v938_v10 = vpack.c.bf16 %v578_v7, %v576_v6 }
 0x259   :  { %899 = vmatpush1.bf16.msra.mxu1 %v898_v12  ;;  %931 = vmatpush1.bf16.msra.mxu0 %v930_v62  ;;  %v580_v12 = vld [vmem:[#allocation8 + $0x100] sm:$0xff]  ;;  %v468_v62 = vrot.slane %v463_v61, %v1273_v20 }
 0x25a   :  { %901 = vmatprep.subr.bf16.mxu1 %v900_v13  ;;  %933 = vmatprep.subr.bf16.mxu0 %v932_v63  ;;  %v582_v13 = vld [vmem:[#allocation8 + $0x110] sm:$0xff]  ;;  %v472_v63 = vrot.slane %v463_v61, %v1278_v22 }
 0x25b   :  { %v942_v16 = vpack.c.bf16 %v582_v13, %v580_v12 }
 0x25d   :  { %903 = vmatpush1.bf16.msra.mxu1 %v902_v18  ;;  %935 = vmatpush1.bf16.msra.mxu0 %v934_v4  ;;  %v584_v18 = vld [vmem:[#allocation8 + $0x120] sm:$0xff] }
 0x25e   :  { %905 = vmatprep.subr.bf16.mxu1 %v904_v19  ;;  %937 = vmatprep.subr.bf16.mxu0 %v936_v5  ;;  %v586_v19 = vld [vmem:[#allocation8 + $0x130] sm:$0xff] }
 0x261   :  { %907 = vmatpush1.bf16.msra.mxu1 %v906_v24  ;;  %939 = vmatpush1.bf16.msra.mxu0 %v938_v10  ;;  %v946_v24 = vpack.c.bf16 %v586_v19, %v584_v18 }
 0x262   :  { %941 = vmatprep.subr.bf16.mxu0 %v940_v11 }
 0x265   :  { %943 = vmatpush1.bf16.msra.mxu0 %v942_v16 }
 0x266   :  { %945 = vmatprep.subr.bf16.mxu0 %v944_v17 }
 0x269   :  { %947 = vmatpush1.bf16.msra.mxu0 %v946_v24 }
 0x26a   :  { %949 = vmatprep.subr.bf16.mxu0 %v948_v25 }
 0x26d   :  { %951 = vmatpush1.bf16.msra.mxu0 %v950_v30 }
 0x26e   :  { %953 = vmatprep.subr.bf16.mxu0 %v952_v31 }
 0x271   :  { %955 = vmatpush1.bf16.msra.mxu0 %v954_v36 }
 0x272   :  { %957 = vmatprep.subr.bf16.mxu0 %v956_v37 }
 0x275   :  { %959 = vmatpush1.bf16.msra.mxu0 %v958_v42 }
 0x276   :  { %961 = vmatprep.subr.bf16.mxu0 %v960_v43 }
 0x279   :  { %963 = vmatpush1.bf16.msra.mxu0 %v962_v48 }
 0x27a   :  { %965 = vmatprep.subr.bf16.mxu0 %v964_v49 }
 0x27d   :  { %967 = vmatpush1.bf16.msra.mxu0 %v966_v54 }
 0x27e   :  { %969 = vmatprep.subr.bf16.mxu0 %v968_v57 }
 0x281   :  { %971 = vmatpush1.bf16.msra.mxu0 %v970_v60 }
 0x317   :  { %v427_v50 = vpop.f32.mrb[2].mxu1 }
 0x318   :  { %700 = vst [vmem:[#allocation11] sm:$0xff] %v427_v50  ;;  %540 = vmatmul.mubr.f32.vlgmr.msra.gmra.mrb[4].mxu1 %v427_v50  ;;  %v779_v51 = vpop.f32.mrb[3].mxu1 }
 0x3eb   :  { %v541_v0 = vpop.f32.mrb[4].mxu1 }
 0x3ec   :  { %v542_v1 = vadd.f32 %v541_v0, %v468_v62  ;;  %v543_v2 = vpop.f32.mrb[5].mxu1 }
 0x3ed   :  { %v544_v3 = vadd.f32 %v543_v2, %v472_v63 }
 0x3ee   :  { %v546_v5 = vmax.f32 %v542_v1, 0.0 }
 0x3ef   :  { %v547_v4 = vmax.f32 %v544_v3, 0.0 }
 0x3f1   :  { %688 = vmatprep.mubr.f32.mxu0 %v547_v4 }
 0x3f2   :  { %689 = vmatmul.mubr.f32.vlgmr.msra.gmra.mrb[2].mxu0 %v546_v5 }
 0x3f3   :  { %1083 = shalt.err (!%p1080_p8)
}
 0x3f4   :  { %s1084_s28 = scalar_lea.hbm %s1339_s11, 128 }
 0x3f5   :  { %p1085_p9 = scmp.ne.s32.totalorder %s1339_s11, %s1084_s28  ;;  %p1088_p10 = scmp.lt.u32.totalorder %s1084_s28, %s1339_s11 }
 0x3f7   :  { %p1090_p11 = pnand %p1088_p10, %p1085_p9 }
 0x3f9   :  { %1093 = shalt.err (!%p1090_p11)
}
 0x3fa   :  { %712 = dma.vmem_to_hbm [thread:$0]  %s710_s1, 128, %s1339_s11, [#allocation4]  }
 0x3fb   :  { %s1094_s13 = scalar_lea.vmem %s720_s25, 128  ;;  %p1099_p13 = scmp.lt.s32.totalorder %s720_s25, %s720_s25 }
 0x3fc   :  { %p1095_p12 = scmp.ne.s32.totalorder %s720_s25, %s1094_s13  ;;  %p1100_p0 = scmp.lt.s32.totalorder %s1094_s13, %s1094_s13 }
 0x3fe   :  { %p1101_p1 = por %p1100_p0, %p1099_p13 }
 0x400   :  { %p1102_p2 = pnand %p1101_p1, %p1095_p12 }
 0x402   :  { %1105 = shalt.err (!%p1102_p2)
}
 0x403   :  { %s1106_s22 = scalar_lea.hbm %s1340_s12, 128 }
 0x404   :  { %p1107_p3 = scmp.ne.s32.totalorder %s1340_s12, %s1106_s22  ;;  %p1110_p4 = scmp.lt.u32.totalorder %s1106_s22, %s1340_s12 }
 0x406   :  { %p1112_p5 = pnand %p1110_p4, %p1107_p3 }
 0x408   :  { %1115 = shalt.err (!%p1112_p5)
}
 0x409   :  { %722 = dma.vmem_to_hbm [thread:$0]  %s720_s25, 128, %s1340_s12, [#allocation12]   ;;  %v612_v6 = vld [vmem:[%s1337_s9] sm:$0x3] }
 0x40a   :  { %v617_v7 = vrot.slane %v612_v6, %v1273_v20  ;;  %v621_v8 = vrot.slane %v612_v6, %v1278_v22 }
 0x4c5   :  { %v690_v9 = vpop.f32.mrb[2].mxu0 }
 0x4c6   :  { %v691_v10 = vadd.f32 %v690_v9, %v617_v7  ;;  %v692_v11 = vpop.f32.mrb[3].mxu0 }
 0x4c7   :  { %v693_v12 = vadd.f32 %v692_v11, %v621_v8 }
 0x4c8   :  { %v695_v13 = vmax.f32 %v691_v10, 0.0 }
 0x4c9   :  { %v696_v14 = vmax.f32 %v693_v12, 0.0 }
 0x4ca   :  { %697 = vst [vmem:[%s1338_s10] sm:$0xff] %v695_v13 }
 0x4cb   :  { %698 = vst [vmem:[%s1338_s10 + $0x8] sm:$0xff] %v696_v14 }
 0x4cc   :  { %1122 = dma.done.wait [#allocation4], 128  }
 0x4cd   :  { %1123 = vsyncadd [#allocation4], 4294967168 }
 0x4ce   :  { %1124 = dma.done.wait [#allocation12], 128  }
 0x4cf   :  { %1125 = vsyncadd [#allocation12], 4294967168 }
 0x4d0   :  { %731 = vsyncpa [#allocation3], 1 }
 0x4d1   :  { %732 = vsyncpa [#allocation6], 1 }
 0x4d2   :  { %733 = vsyncpa [#allocation9], 1 }
 0x4d3   :  { %734 = vsyncpa [#allocation4], 1 }
 0x4d4   :  { %735 = vsyncpa [#allocation12], 1 }

</bundles_post_ra>
